<compile_context>
chip_gen: v6e
topology: v6e:2x2x1
jax: 0.10.0
libtpu: 0.0.40
codegen_flags: <defaults>
</compile_context>

<pallas_src>
import functools

import jax
import jax.numpy as jnp
from jax.experimental import pallas as pl
from jax.experimental.pallas import tpu as pltpu


def _round_up(n, m):
    return ((n + m - 1) // m) * m


def _fused_mlp_kernel(*refs, bias_offsets, bias_sizes):
    # refs = (x_ref, w1_ref, ..., wL_ref, bias_cat_ref, o_ref)
    num_layers = len(bias_offsets)
    x_ref = refs[0]
    w_refs = refs[1:1 + num_layers]
    b_ref = refs[1 + num_layers]
    o_ref = refs[-1]

    h = x_ref[...]  # f32 activations live in vregs between layers
    for i in range(num_layers):
        # bf16 LHS/RHS on the MXU, f32 accumulation.
        acc = jnp.dot(
            h.astype(jnp.bfloat16),
            w_refs[i][...],
            preferred_element_type=jnp.float32,
        )
        off, n = bias_offsets[i], bias_sizes[i]
        # Static, 128-aligned slice of the concatenated bias -> (1, Np) broadcast.
        h = acc + b_ref[:, off:off + n]
        if i != num_layers - 1:
            h = jnp.maximum(h, 0.0)  # ReLU on hidden layers only
    o_ref[...] = h.astype(o_ref.dtype)


def fused_mlp_pallas(x_pad, w_list, b_cat, bias_offsets, bias_sizes):
    """x_pad: (Mp, K0p) f32; w_list: [(Kp, Np) bf16, ...]; b_cat: (1, sum(Np)) f32."""
    Mp, _ = x_pad.shape
    Np_last = w_list[-1].shape[1]
    operands = [x_pad] + list(w_list) + [b_cat]

    flops = 0
    bytes_accessed = int(x_pad.size) * 4 + int(b_cat.size) * 4 + Mp * Np_last * 4
    for w in w_list:
        Kp, Np = w.shape
        flops += 2 * Mp * Kp * Np
        bytes_accessed += int(w.size) * 2  # bf16 weights

    kernel = functools.partial(
        _fused_mlp_kernel, bias_offsets=bias_offsets, bias_sizes=bias_sizes
    )
    return pl.pallas_call(
        kernel,
        out_shape=jax.ShapeDtypeStruct((Mp, Np_last), jnp.float32),
        # No grid: single invocation, whole arrays resident in VMEM, no
        # double-buffering machinery.  Footprint here is < 1 MiB, well under
        # the scoped-VMEM defaults on v5e/v6e/v7x, so no vmem_limit override.
        in_specs=[pl.BlockSpec(memory_space=pltpu.MemorySpace.VMEM)] * len(operands),
        out_specs=pl.BlockSpec(memory_space=pltpu.MemorySpace.VMEM),
        cost_estimate=pl.CostEstimate(
            flops=int(flops), transcendentals=0, bytes_accessed=int(bytes_accessed)
        ),
    )(*operands)


def init_fc_params(key, input_dims, n_hiddens, num_classes):
    """Xavier-uniform weights stored PyTorch-style (out, in), zero biases
    (matches fc.init_weights)."""
    dims = [input_dims] + list(n_hiddens) + [num_classes]
    params = []
    for i in range(len(dims) - 1):
        fan_in, fan_out = dims[i], dims[i + 1]
        key, sub = jax.random.split(key)
        limit = (6.0 / (fan_in + fan_out)) ** 0.5
        w = jax.random.uniform(
            sub, (fan_out, fan_in), dtype=jnp.float32, minval=-limit, maxval=limit
        )
        b = jnp.zeros((fan_out,), dtype=jnp.float32)
        params.append((w, b))
    return params


def prepare_params(params):
    """One-time prep OUTSIDE the jit'd forward:
       * transpose weights to (in, out), zero-pad both dims to 128-multiples,
         cast to bfloat16 (the kernel is weight-DMA bound),
       * concatenate all padded biases into one (1, sum(Np)) f32 operand with
         static 128-aligned per-layer offsets."""
    w_list, b_chunks, offsets, sizes = [], [], [], []
    off = 0
    for (w, b) in params:
        out_f, in_f = w.shape
        Kp = _round_up(in_f, 128)
        Np = _round_up(out_f, 128)
        w_t = (
            jnp.zeros((Kp, Np), jnp.float32)
            .at[:in_f, :out_f]
            .set(w.T)
            .astype(jnp.bfloat16)
        )
        b_p = jnp.zeros((Np,), jnp.float32).at[:out_f].set(b)
        w_list.append(w_t)
        b_chunks.append(b_p)
        offsets.append(off)
        sizes.append(Np)
        off += Np
    b_cat = jnp.concatenate(b_chunks).reshape(1, off)
    return w_list, b_cat, tuple(offsets), tuple(sizes)


def fc_forward(x, w_list, b_cat, *, bias_offsets, bias_sizes, num_classes):
    """x: (B, C, H, W) float32 -> logits (B, num_classes)."""
    B = x.shape[0]
    h = x.reshape(B, -1)  # same as torch .view(B, -1) on contiguous NCHW
    K0 = h.shape[1]
    K0p = w_list[0].shape[0]
    Mp = _round_up(B, 16)  # 16 sublanes: bf16 packs 16 rows per vreg
    h = jnp.pad(h, ((0, Mp - B), (0, K0p - K0)))
    out_pad = fused_mlp_pallas(h, w_list, b_cat, bias_offsets, bias_sizes)
    # TODO(synk): batch_norm / dropout branches omitted — module defaults
    # (batch_norm=False, keep_prob=1.0) make them identity in forward.
    return out_pad[:B, :num_classes]


if __name__ == "__main__":
    # FLAGS-equivalent small config
    B, C, H, W = 2, 4, 16, 16          # input_dims = 4*16*16 = 1024
    n_hiddens = (256, 128)
    num_classes = 10
    input_dims = C * H * W

    key = jax.random.PRNGKey(0)
    key, xk = jax.random.split(key)
    x = jax.random.normal(xk, (B, C, H, W), dtype=jnp.float32)

    params = init_fc_params(key, input_dims, n_hiddens, num_classes)
    w_list, b_cat, offsets, sizes = prepare_params(params)  # prep ONCE, outside jit

    fwd = jax.jit(
        functools.partial(
            fc_forward,
            bias_offsets=offsets,
            bias_sizes=sizes,
            num_classes=num_classes,
        )
    )
    logits = fwd(x, w_list, b_cat)
    jax.block_until_ready(logits)

    # Matching-precision reference: same bf16 weights/activations, f32 accumulation.
    ref = x.reshape(B, -1).astype(jnp.float32)
    for i, (w, b) in enumerate(params):
        w_bf16 = w.T.astype(jnp.bfloat16)
        ref = jnp.dot(
            ref.astype(jnp.bfloat16), w_bf16, preferred_element_type=jnp.float32
        ) + b[None, :]
        if i != len(params) - 1:
            ref = jnp.maximum(ref, 0.0)

    assert logits.shape == (B, num_classes)
    assert jnp.allclose(logits, ref, atol=1e-2, rtol=1e-2), float(
        jnp.max(jnp.abs(logits - ref))
    )

    print("KERNEL_OK")
</pallas_src>

<mosaic_0001>
module attributes {stable_mosaic.version = 11 : i64} {
  func.func @_fused_mlp_kernel(%arg0: memref<16x1024xf32, #tpu.memory_space<vmem>>, %arg1: memref<1024x256xbf16, #tpu.memory_space<vmem>>, %arg2: memref<256x128xbf16, #tpu.memory_space<vmem>>, %arg3: memref<128x128xbf16, #tpu.memory_space<vmem>>, %arg4: memref<1x512xf32, #tpu.memory_space<vmem>>, %arg5: memref<16x128xf32, #tpu.memory_space<vmem>>) attributes {dimension_semantics = [], scalar_prefetch = 0 : i64, scratch_operands = 0 : i64, tpu.core_type = #tpu.core_type<tc>} {
    %c0 = arith.constant 0 : index
    %c0_0 = arith.constant 0 : index
    %0 = vector.load %arg0[%c0, %c0_0] : memref<16x1024xf32, #tpu.memory_space<vmem>>, vector<16x1024xf32>
    %1 = arith.truncf %0 : vector<16x1024xf32> to vector<16x1024xbf16>
    %c0_1 = arith.constant 0 : index
    %c0_2 = arith.constant 0 : index
    %2 = vector.load %arg1[%c0_1, %c0_2] : memref<1024x256xbf16, #tpu.memory_space<vmem>>, vector<1024x256xbf16>
    %cst = arith.constant dense<0.000000e+00> : vector<16x256xf32>
    %3 = tpu.matmul %1, %2, %cst {dimension_numbers = #tpu.dot_dimension_numbers<[1], [0], [0], [1], [0, 0, 1, 1], [], []>} : vector<16x1024xbf16>, vector<1024x256xbf16>, vector<16x256xf32> -> vector<16x256xf32>
    %c0_3 = arith.constant 0 : index
    %c0_4 = arith.constant 0 : index
    %4 = vector.load %arg4[%c0_3, %c0_4] : memref<1x512xf32, #tpu.memory_space<vmem>>, vector<1x256xf32>
    %5 = vector.broadcast %4 : vector<1x256xf32> to vector<16x256xf32>
    %6 = arith.addf %3, %5 : vector<16x256xf32>
    %cst_5 = arith.constant 0.000000e+00 : f32
    %7 = vector.broadcast %cst_5 : f32 to vector<16x256xf32>
    %8 = arith.maximumf %6, %7 : vector<16x256xf32>
    %9 = arith.truncf %8 : vector<16x256xf32> to vector<16x256xbf16>
    %c0_6 = arith.constant 0 : index
    %c0_7 = arith.constant 0 : index
    %10 = vector.load %arg2[%c0_6, %c0_7] : memref<256x128xbf16, #tpu.memory_space<vmem>>, vector<256x128xbf16>
    %cst_8 = arith.constant dense<0.000000e+00> : vector<16x128xf32>
    %11 = tpu.matmul %9, %10, %cst_8 {dimension_numbers = #tpu.dot_dimension_numbers<[1], [0], [0], [1], [0, 0, 1, 1], [], []>} : vector<16x256xbf16>, vector<256x128xbf16>, vector<16x128xf32> -> vector<16x128xf32>
    %c0_9 = arith.constant 0 : index
    %c256 = arith.constant 256 : index
    %12 = vector.load %arg4[%c0_9, %c256] : memref<1x512xf32, #tpu.memory_space<vmem>>, vector<1x128xf32>
    %13 = vector.broadcast %12 : vector<1x128xf32> to vector<16x128xf32>
    %14 = arith.addf %11, %13 : vector<16x128xf32>
    %cst_10 = arith.constant 0.000000e+00 : f32
    %15 = vector.broadcast %cst_10 : f32 to vector<16x128xf32>
    %16 = arith.maximumf %14, %15 : vector<16x128xf32>
    %17 = arith.truncf %16 : vector<16x128xf32> to vector<16x128xbf16>
    %c0_11 = arith.constant 0 : index
    %c0_12 = arith.constant 0 : index
    %18 = vector.load %arg3[%c0_11, %c0_12] : memref<128x128xbf16, #tpu.memory_space<vmem>>, vector<128x128xbf16>
    %cst_13 = arith.constant dense<0.000000e+00> : vector<16x128xf32>
    %19 = tpu.matmul %17, %18, %cst_13 {dimension_numbers = #tpu.dot_dimension_numbers<[1], [0], [0], [1], [0, 0, 1, 1], [], []>} : vector<16x128xbf16>, vector<128x128xbf16>, vector<16x128xf32> -> vector<16x128xf32>
    %c0_14 = arith.constant 0 : index
    %c384 = arith.constant 384 : index
    %20 = vector.load %arg4[%c0_14, %c384] : memref<1x512xf32, #tpu.memory_space<vmem>>, vector<1x128xf32>
    %21 = vector.broadcast %20 : vector<1x128xf32> to vector<16x128xf32>
    %22 = arith.addf %19, %21 : vector<16x128xf32>
    %c0_15 = arith.constant 0 : index
    %c0_16 = arith.constant 0 : index
    %23 = vector.load %arg5[%c0_15, %c0_16] : memref<16x128xf32, #tpu.memory_space<vmem>>, vector<16x128xf32>
    tpu.vector_store %arg5[%c0_15, %c0_16], %22 {strides = array<i32>} : memref<16x128xf32, #tpu.memory_space<vmem>>, vector<16x128xf32>,
    return
  }
}

</mosaic_0001>

<bundles_post_ra>
// kernel: fc_forward.1
= control target key start
LH: loop header
LB: loop body
LE: loop exit
PB: predicated region body
PF: predicated region fallthrough
CT: control target
= control target key end

     0   :  { %10 = vsyncpa [#allocation3], 0  ;;  %s1763_s18 = smov [#allocation2]   ;;  %s1945_s0 = inlined_call_operand.vmem [shape: f32[16,1024], index: 0, kind: input, shape index: {}]   ;;  %s1946_s1 = inlined_call_operand.hbm [shape: bf16[1024,256], index: 1, kind: input, shape index: {}]   ;;  %s1947_s2 = inlined_call_operand.vmem [shape: bf16[256,128], index: 2, kind: input, shape index: {}]   ;;  %s1948_s3 = inlined_call_operand.vmem [shape: bf16[128,128], index: 3, kind: input, shape index: {}]   ;;  %s1949_s4 = inlined_call_operand.vmem [shape: f32[1,512], index: 4, kind: input, shape index: {}]   ;;  %s1950_s5 = inlined_call_operand.vmem [shape: f32[16,128], index: 5, kind: output, shape index: {}]  }
   0x1   :  { %s18_s19 = sshll.u32 %s1763_s18, 4  ;;  %s19_s19 = int_to_ptr.vmem [resolvable:$true] %s18_s19 }
   0x2   :  { %s1749_s20 = scalar_lea.vmem %s19_s19, 16384  ;;  %p1754_p1 = scmp.lt.s32.totalorder %s19_s19, %s19_s19 }
   0x3   :  { %p1750_p0 = scmp.ne.s32.totalorder %s19_s19, %s1749_s20  ;;  %p1755_p2 = scmp.lt.s32.totalorder %s1749_s20, %s1749_s20 }
   0x5   :  { %p1756_p3 = por %p1755_p2, %p1754_p1 }
   0x7   :  { %p1757_p4 = pnand %p1756_p3, %p1750_p0 }
   0x9   :  { %1760 = shalt.err (!%p1757_p4)
}
   0xa   :  { %s1764_s21 = smov 128   ;;  %s1765_s22 = smov 8  }
   0xb   :  { %24 = dma.hbm_to_vmem [thread:$0]  %s1946_s1, 16384, %s19_s19, [#allocation3], %s1764_s21, %s1764_s21, %s1765_s22  }
   0xc   :  { %1761 = dma.done.wait [#allocation3], 16384  }
   0xd   :  { %1762 = vsyncadd [#allocation3], 4294950912  ;;  %v1525_v0 = vld [vmem:[#allocation2 + $0x74] ss:$8 sps:$4 sm:$0xff]   ;;  %v1529_v2 = vld [vmem:[#allocation2 + $0x70] ss:$8 sps:$4 sm:$0xff]  }
   0xe   :  { %v1527_v1 = vld [vmem:[#allocation2 + $0x174] ss:$8 sps:$4 sm:$0xff]   ;;  %839 = vmatprep.subr.bf16.mxu0 %v1525_v0  ;;  %v1530_v3 = vld [vmem:[#allocation2 + $0x170] ss:$8 sps:$4 sm:$0xff]   ;;  %v1531_v4 = vld [vmem:[#allocation2 + $0x64] ss:$8 sps:$4 sm:$0xff]  }
   0xf   :  { %882 = vmatprep.subr.bf16.mxu1 %v1527_v1  ;;  %840 = vmatpush1.bf16.msra.mxu0 %v1529_v2  ;;  %v1533_v5 = vld [vmem:[#allocation2 + $0x164] ss:$8 sps:$4 sm:$0xff]   ;;  %v1535_v6 = vld [vmem:[#allocation2 + $0x60] ss:$8 sps:$4 sm:$0xff]   ;;  %v1537_v8 = vld [vmem:[#allocation2 + $0x54] ss:$8 sps:$4 sm:$0xff]  }
  0x10   :  { %883 = vmatpush1.bf16.msra.mxu1 %v1530_v3  ;;  %841 = vmatprep.subr.bf16.mxu0 %v1531_v4  ;;  %v1536_v7 = vld [vmem:[#allocation2 + $0x160] ss:$8 sps:$4 sm:$0xff]   ;;  %v1539_v9 = vld [vmem:[#allocation2 + $0x154] ss:$8 sps:$4 sm:$0xff]   ;;  %v1541_v10 = vld [vmem:[#allocation2 + $0x50] ss:$8 sps:$4 sm:$0xff]  }
  0x11   :  { %884 = vmatprep.subr.bf16.mxu1 %v1533_v5  ;;  %v1542_v11 = vld [vmem:[#allocation2 + $0x150] ss:$8 sps:$4 sm:$0xff]   ;;  %v1543_v12 = vld [vmem:[#allocation2 + $0x44] ss:$8 sps:$4 sm:$0xff]   ;;  %v1547_v14 = vld [vmem:[#allocation2 + $0x40] ss:$8 sps:$4 sm:$0xff]  }
  0x12   :  { %v1545_v13 = vld [vmem:[#allocation2 + $0x144] ss:$8 sps:$4 sm:$0xff]   ;;  %v1548_v15 = vld [vmem:[#allocation2 + $0x140] ss:$8 sps:$4 sm:$0xff]   ;;  %v1549_v16 = vld [vmem:[#allocation2 + $0x34] ss:$8 sps:$4 sm:$0xff]  }
  0x13   :  { %842 = vmatpush1.bf16.msra.mxu0 %v1535_v6  ;;  %v1551_v17 = vld [vmem:[#allocation2 + $0x134] ss:$8 sps:$4 sm:$0xff]   ;;  %v1553_v18 = vld [vmem:[#allocation2 + $0x30] ss:$8 sps:$4 sm:$0xff]   ;;  %v1555_v20 = vld [vmem:[#allocation2 + $0x24] ss:$8 sps:$4 sm:$0xff]  }
  0x14   :  { %885 = vmatpush1.bf16.msra.mxu1 %v1536_v7  ;;  %843 = vmatprep.subr.bf16.mxu0 %v1537_v8  ;;  %v1554_v19 = vld [vmem:[#allocation2 + $0x130] ss:$8 sps:$4 sm:$0xff]   ;;  %v1557_v21 = vld [vmem:[#allocation2 + $0x124] ss:$8 sps:$4 sm:$0xff]   ;;  %v1559_v22 = vld [vmem:[#allocation2 + $0x20] ss:$8 sps:$4 sm:$0xff]  }
  0x15   :  { %886 = vmatprep.subr.bf16.mxu1 %v1539_v9  ;;  %v1560_v23 = vld [vmem:[#allocation2 + $0x120] ss:$8 sps:$4 sm:$0xff]   ;;  %v1561_v24 = vld [vmem:[#allocation2 + $0x14] ss:$8 sps:$4 sm:$0xff]   ;;  %v1565_v26 = vld [vmem:[#allocation2 + $0x10] ss:$8 sps:$4 sm:$0xff]  }
  0x16   :  { %v1563_v25 = vld [vmem:[#allocation2 + $0x114] ss:$8 sps:$4 sm:$0xff]   ;;  %v1566_v27 = vld [vmem:[#allocation2 + $0x110] ss:$8 sps:$4 sm:$0xff]   ;;  %v1567_v28 = vld [vmem:[#allocation2 + $0x4] ss:$8 sps:$4 sm:$0xff]  }
  0x17   :  { %844 = vmatpush1.bf16.msra.mxu0 %v1541_v10  ;;  %v1569_v29 = vld [vmem:[#allocation2 + $0x104] ss:$8 sps:$4 sm:$0xff]   ;;  %v1571_v30 = vld [vmem:[#allocation2] ss:$8 sps:$4 sm:$0xff]   ;;  %v1573_v32 = vld [vmem:[#allocation2 + $0xf4] ss:$8 sps:$4 sm:$0xff]  }
  0x18   :  { %887 = vmatpush1.bf16.msra.mxu1 %v1542_v11  ;;  %845 = vmatprep.subr.bf16.mxu0 %v1543_v12  ;;  %v1572_v31 = vld [vmem:[#allocation2 + $0x100] ss:$8 sps:$4 sm:$0xff]   ;;  %v1575_v33 = vld [vmem:[#allocation2 + $0x1f4] ss:$8 sps:$4 sm:$0xff]   ;;  %v1577_v34 = vld [vmem:[#allocation2 + $0xf0] ss:$8 sps:$4 sm:$0xff]  }
  0x19   :  { %888 = vmatprep.subr.bf16.mxu1 %v1545_v13  ;;  %v1578_v35 = vld [vmem:[#allocation2 + $0x1f0] ss:$8 sps:$4 sm:$0xff]   ;;  %v1579_v36 = vld [vmem:[#allocation2 + $0xe4] ss:$8 sps:$4 sm:$0xff]   ;;  %v1583_v38 = vld [vmem:[#allocation2 + $0xe0] ss:$8 sps:$4 sm:$0xff]  }
  0x1a   :  { %v1581_v37 = vld [vmem:[#allocation2 + $0x1e4] ss:$8 sps:$4 sm:$0xff]   ;;  %v1584_v39 = vld [vmem:[#allocation2 + $0x1e0] ss:$8 sps:$4 sm:$0xff]   ;;  %v1585_v40 = vld [vmem:[#allocation2 + $0xd4] ss:$8 sps:$4 sm:$0xff]  }
  0x1b   :  { %846 = vmatpush1.bf16.msra.mxu0 %v1547_v14  ;;  %v1587_v41 = vld [vmem:[#allocation2 + $0x1d4] ss:$8 sps:$4 sm:$0xff]   ;;  %v1589_v42 = vld [vmem:[#allocation2 + $0xd0] ss:$8 sps:$4 sm:$0xff]   ;;  %v1591_v44 = vld [vmem:[#allocation2 + $0xc4] ss:$8 sps:$4 sm:$0xff]  }
  0x1c   :  { %889 = vmatpush1.bf16.msra.mxu1 %v1548_v15  ;;  %847 = vmatprep.subr.bf16.mxu0 %v1549_v16  ;;  %v1590_v43 = vld [vmem:[#allocation2 + $0x1d0] ss:$8 sps:$4 sm:$0xff]   ;;  %v1593_v45 = vld [vmem:[#allocation2 + $0x1c4] ss:$8 sps:$4 sm:$0xff]   ;;  %v1595_v50 = vld [vmem:[#allocation2 + $0xc0] ss:$8 sps:$4 sm:$0xff]  }
  0x1d   :  { %890 = vmatprep.subr.bf16.mxu1 %v1551_v17  ;;  %v36_v46 = vld [vmem:[%s1945_s0 + $0x8] sm:$0xff]  ;;  %v38_v48 = vld [vmem:[%s1945_s0 + $0x18] sm:$0xff]  ;;  %v35_v6 = vld [vmem:[%s1945_s0] sm:$0xff]  ;;  %vm1767_vm0 = vmmov 0  }
  0x1e   :  { %v44_v47 = vld [vmem:[%s1945_s0 + $0x48] sm:$0xff]  ;;  %v46_v49 = vld [vmem:[%s1945_s0 + $0x58] sm:$0xff]  ;;  %v43_v7 = vld [vmem:[%s1945_s0 + $0x40] sm:$0xff] }
  0x1f   :  { %848 = vmatpush1.bf16.msra.mxu0 %v1553_v18  ;;  %v1596_v51 = vld [vmem:[#allocation2 + $0x1c0] ss:$8 sps:$4 sm:$0xff]   ;;  %v1597_v52 = vld [vmem:[#allocation2 + $0xb4] ss:$8 sps:$4 sm:$0xff]   ;;  %v52_v53 = vpack.c.bf16 %v44_v47, %v36_v46  ;;  %v54_v54 = vpack.c.bf16 %v46_v49, %v38_v48  ;;  %v1601_v56 = vld [vmem:[#allocation2 + $0xb0] ss:$8 sps:$4 sm:$0xff]   ;;  %v51_v12 = vpack.c.bf16 %v43_v7, %v35_v6 }
  0x20   :  { %891 = vmatpush1.bf16.msra.mxu1 %v1554_v19  ;;  %849 = vmatprep.subr.bf16.mxu0 %v1555_v20  ;;  %v1599_v55 = vld [vmem:[#allocation2 + $0x1b4] ss:$8 sps:$4 sm:$0xff]   ;;  %v1602_v57 = vld [vmem:[#allocation2 + $0x1b0] ss:$8 sps:$4 sm:$0xff]   ;;  %v1603_v58 = vld [vmem:[#allocation2 + $0xa4] ss:$8 sps:$4 sm:$0xff]  }
  0x21   :  { %892 = vmatprep.subr.bf16.mxu1 %v1557_v21  ;;  %871 = vmatprep.mubr.bf16.mxu0 %v52_v53  ;;  %v1605_v59 = vld [vmem:[#allocation2 + $0x1a4] ss:$8 sps:$4 sm:$0xff]   ;;  %v1607_v60 = vld [vmem:[#allocation2 + $0xa0] ss:$8 sps:$4 sm:$0xff]   ;;  %v1609_v62 = vld [vmem:[#allocation2 + $0x94] ss:$8 sps:$4 sm:$0xff]  }
  0x22   :  { %914 = vmatprep.mubr.bf16.mxu1 %v54_v54  ;;  %v1608_v61 = vld [vmem:[#allocation2 + $0x1a0] ss:$8 sps:$4 sm:$0xff]   ;;  %v1611_v63 = vld [vmem:[#allocation2 + $0x194] ss:$8 sps:$4 sm:$0xff]   ;;  %v1613_v0 = vld [vmem:[#allocation2 + $0x90] ss:$8 sps:$4 sm:$0xff]  }
  0x23   :  { %850 = vmatpush1.bf16.msra.mxu0 %v1559_v22  ;;  %v1614_v1 = vld [vmem:[#allocation2 + $0x190] ss:$8 sps:$4 sm:$0xff]   ;;  %v1615_v2 = vld [vmem:[#allocation2 + $0x84] ss:$8 sps:$4 sm:$0xff]   ;;  %v1619_v4 = vld [vmem:[#allocation2 + $0x80] ss:$8 sps:$4 sm:$0xff]  }
  0x24   :  { %893 = vmatpush1.bf16.msra.mxu1 %v1560_v23  ;;  %851 = vmatprep.subr.bf16.mxu0 %v1561_v24  ;;  %v1617_v3 = vld [vmem:[#allocation2 + $0x184] ss:$8 sps:$4 sm:$0xff]   ;;  %v1620_v5 = vld [vmem:[#allocation2 + $0x180] ss:$8 sps:$4 sm:$0xff]   ;;  %v37_v8 = vld [vmem:[%s1945_s0 + $0x10] sm:$0xff] }
  0x25   :  { %894 = vmatprep.subr.bf16.mxu1 %v1563_v25  ;;  %v45_v9 = vld [vmem:[%s1945_s0 + $0x50] sm:$0xff]  ;;  %v1629_v16 = vld [vmem:[#allocation2 + $0x264] ss:$8 sps:$4 sm:$0xff]   ;;  %v1627_v18 = vld [vmem:[#allocation2 + $0x260] ss:$8 sps:$4 sm:$0xff]  }
  0x26   :  { %v1623_v10 = vld [vmem:[#allocation2 + $0x274] ss:$8 sps:$4 sm:$0xff]   ;;  %v53_v13 = vpack.c.bf16 %v45_v9, %v37_v8  ;;  %v1621_v14 = vld [vmem:[#allocation2 + $0x270] ss:$8 sps:$4 sm:$0xff]   ;;  %v1632_v17 = vld [vmem:[#allocation2 + $0x364] ss:$8 sps:$4 sm:$0xff]  }
  0x27   :  { %852 = vmatpush1.bf16.msra.mxu0 %v1565_v26  ;;  %v1626_v11 = vld [vmem:[#allocation2 + $0x374] ss:$8 sps:$4 sm:$0xff]   ;;  %v1624_v15 = vld [vmem:[#allocation2 + $0x370] ss:$8 sps:$4 sm:$0xff]   ;;  %v1630_v19 = vld [vmem:[#allocation2 + $0x360] ss:$8 sps:$4 sm:$0xff]  }
  0x28   :  { %895 = vmatpush1.bf16.msra.mxu1 %v1566_v27  ;;  %853 = vmatprep.subr.bf16.mxu0 %v1567_v28  ;;  %v1635_v20 = vld [vmem:[#allocation2 + $0x254] ss:$8 sps:$4 sm:$0xff]   ;;  %v1633_v22 = vld [vmem:[#allocation2 + $0x250] ss:$8 sps:$4 sm:$0xff]   ;;  %v1641_v24 = vld [vmem:[#allocation2 + $0x244] ss:$8 sps:$4 sm:$0xff]  }
  0x29   :  { %896 = vmatprep.subr.bf16.mxu1 %v1569_v29  ;;  %v1638_v21 = vld [vmem:[#allocation2 + $0x354] ss:$8 sps:$4 sm:$0xff]   ;;  %v1636_v23 = vld [vmem:[#allocation2 + $0x350] ss:$8 sps:$4 sm:$0xff]   ;;  %v1644_v25 = vld [vmem:[#allocation2 + $0x344] ss:$8 sps:$4 sm:$0xff]  }
  0x2a   :  { %v1639_v26 = vld [vmem:[#allocation2 + $0x240] ss:$8 sps:$4 sm:$0xff]   ;;  %v1647_v28 = vld [vmem:[#allocation2 + $0x234] ss:$8 sps:$4 sm:$0xff]   ;;  %v1672_v53 = vld [vmem:[#allocation2 + $0x3f0] ss:$8 sps:$4 sm:$0xff]  }
  0x2b   :  { %854 = vmatpush1.bf16.msra.mxu0 %v1571_v30  ;;  %v1642_v27 = vld [vmem:[#allocation2 + $0x340] ss:$8 sps:$4 sm:$0xff]   ;;  %v1650_v29 = vld [vmem:[#allocation2 + $0x334] ss:$8 sps:$4 sm:$0xff]   ;;  %v1645_v30 = vld [vmem:[#allocation2 + $0x230] ss:$8 sps:$4 sm:$0xff]  }
  0x2c   :  { %897 = vmatpush1.bf16.msra.mxu1 %v1572_v31  ;;  %855 = vmatprep.subr.bf16.mxu0 %v1573_v32  ;;  %v1648_v31 = vld [vmem:[#allocation2 + $0x330] ss:$8 sps:$4 sm:$0xff]   ;;  %v1653_v32 = vld [vmem:[#allocation2 + $0x224] ss:$8 sps:$4 sm:$0xff]   ;;  %v1663_v47 = vld [vmem:[#allocation2 + $0x200] ss:$8 sps:$4 sm:$0xff]  }
  0x2d   :  { %898 = vmatprep.subr.bf16.mxu1 %v1575_v33  ;;  %v1656_v33 = vld [vmem:[#allocation2 + $0x324] ss:$8 sps:$4 sm:$0xff]   ;;  %v50_v46 = vld [vmem:[%s1945_s0 + $0x78] sm:$0xff]  ;;  %v1666_v48 = vld [vmem:[#allocation2 + $0x300] ss:$8 sps:$4 sm:$0xff]  }
  0x2e   :  { %v1677_v54 = vld [vmem:[#allocation2 + $0x2e4] ss:$8 sps:$4 sm:$0xff]   ;;  %v1699_v8 = vld [vmem:[#allocation2 + $0x2a0] ss:$8 sps:$4 sm:$0xff]  }
  0x2f   :  { %856 = vmatpush2.bf16.msra.mxu0 %v1577_v34  ;;  %v1651_v34 = vld [vmem:[#allocation2 + $0x220] ss:$8 sps:$4 sm:$0xff]   ;;  %v1701_v6 = vld [vmem:[#allocation2 + $0x2a4] ss:$8 sps:$4 sm:$0xff]  }
  0x30   :  { %899 = vmatpush2.bf16.msra.mxu1 %v1578_v35  ;;  %857 = vmatprep.subr.bf16.mxu0 %v1579_v36  ;;  %v1654_v35 = vld [vmem:[#allocation2 + $0x320] ss:$8 sps:$4 sm:$0xff]   ;;  %v1659_v36 = vld [vmem:[#allocation2 + $0x214] ss:$8 sps:$4 sm:$0xff]   ;;  %v1704_v7 = vld [vmem:[#allocation2 + $0x3a4] ss:$8 sps:$4 sm:$0xff]  }
  0x31   :  { %900 = vmatprep.subr.bf16.mxu1 %v1581_v37  ;;  %v1662_v37 = vld [vmem:[#allocation2 + $0x314] ss:$8 sps:$4 sm:$0xff]   ;;  %v1702_v9 = vld [vmem:[#allocation2 + $0x3a0] ss:$8 sps:$4 sm:$0xff]  }
  0x33   :  { %858 = vmatpush2.bf16.msra.mxu0 %v1583_v38  ;;  %v1657_v38 = vld [vmem:[#allocation2 + $0x210] ss:$8 sps:$4 sm:$0xff]  }
  0x34   :  { %901 = vmatpush2.bf16.msra.mxu1 %v1584_v39  ;;  %859 = vmatprep.subr.bf16.mxu0 %v1585_v40  ;;  %v1660_v39 = vld [vmem:[#allocation2 + $0x310] ss:$8 sps:$4 sm:$0xff]   ;;  %v40_v40 = vld [vmem:[%s1945_s0 + $0x28] sm:$0xff] }
  0x35   :  { %902 = vmatprep.subr.bf16.mxu1 %v1587_v41  ;;  %v48_v41 = vld [vmem:[%s1945_s0 + $0x68] sm:$0xff] }
  0x37   :  { %860 = vmatpush2.bf16.msra.mxu0 %v1589_v42  ;;  %v42_v42 = vld [vmem:[%s1945_s0 + $0x38] sm:$0xff] }
  0x38   :  { %903 = vmatpush2.bf16.msra.mxu1 %v1590_v43  ;;  %861 = vmatprep.subr.bf16.mxu0 %v1591_v44  ;;  %v1665_v43 = vld [vmem:[#allocation2 + $0x204] ss:$8 sps:$4 sm:$0xff]   ;;  %v58_v49 = vpack.c.bf16 %v50_v46, %v42_v42  ;;  %v1734_v42 = vld [vmem:[%s1948_s3 + $0x30] sm:$0xff]  }
  0x39   :  { %904 = vmatprep.subr.bf16.mxu1 %v1593_v45  ;;  %v1668_v44 = vld [vmem:[#allocation2 + $0x304] ss:$8 sps:$4 sm:$0xff]   ;;  %v56_v45 = vpack.c.bf16 %v48_v41, %v40_v40  ;;  %v1733_v40 = vld [vmem:[%s1948_s3 + $0x38] sm:$0xff]   ;;  %v1766_v41 = vmov 0.0  }
  0x3b   :  { %862 = vmatpush2.bf16.msra.mxu0 %v1595_v50  ;;  %v1671_v50 = vld [vmem:[#allocation2 + $0x2f4] ss:$8 sps:$4 sm:$0xff]  }
  0x3c   :  { %905 = vmatpush2.bf16.msra.mxu1 %v1596_v51  ;;  %863 = vmatprep.subr.bf16.mxu0 %v1597_v52  ;;  %v1674_v51 = vld [vmem:[#allocation2 + $0x3f4] ss:$8 sps:$4 sm:$0xff]   ;;  %v1669_v52 = vld [vmem:[#allocation2 + $0x2f0] ss:$8 sps:$4 sm:$0xff]  }
  0x3d   :  { %906 = vmatprep.subr.bf16.mxu1 %v1599_v55  ;;  %v1680_v55 = vld [vmem:[#allocation2 + $0x3e4] ss:$8 sps:$4 sm:$0xff]  }
  0x3f   :  { %864 = vmatpush2.bf16.msra.mxu0 %v1601_v56  ;;  %v1675_v56 = vld [vmem:[#allocation2 + $0x2e0] ss:$8 sps:$4 sm:$0xff]  }
  0x40   :  { %907 = vmatpush2.bf16.msra.mxu1 %v1602_v57  ;;  %865 = vmatprep.subr.bf16.mxu0 %v1603_v58  ;;  %v1678_v57 = vld [vmem:[#allocation2 + $0x3e0] ss:$8 sps:$4 sm:$0xff]   ;;  %v1683_v58 = vld [vmem:[#allocation2 + $0x2d4] ss:$8 sps:$4 sm:$0xff]  }
  0x41   :  { %908 = vmatprep.subr.bf16.mxu1 %v1605_v59  ;;  %v1686_v59 = vld [vmem:[#allocation2 + $0x3d4] ss:$8 sps:$4 sm:$0xff]  }
  0x43   :  { %866 = vmatpush2.bf16.msra.mxu0 %v1607_v60  ;;  %v1681_v60 = vld [vmem:[#allocation2 + $0x2d0] ss:$8 sps:$4 sm:$0xff]  }
  0x44   :  { %909 = vmatpush2.bf16.msra.mxu1 %v1608_v61  ;;  %867 = vmatprep.subr.bf16.mxu0 %v1609_v62  ;;  %v1684_v61 = vld [vmem:[#allocation2 + $0x3d0] ss:$8 sps:$4 sm:$0xff]   ;;  %v1689_v62 = vld [vmem:[#allocation2 + $0x2c4] ss:$8 sps:$4 sm:$0xff]  }
  0x45   :  { %910 = vmatprep.subr.bf16.mxu1 %v1611_v63  ;;  %v1692_v63 = vld [vmem:[#allocation2 + $0x3c4] ss:$8 sps:$4 sm:$0xff]  }
  0x47   :  { %868 = vmatpush2.bf16.msra.mxu0 %v1613_v0  ;;  %v1687_v0 = vld [vmem:[#allocation2 + $0x2c0] ss:$8 sps:$4 sm:$0xff]  }
  0x48   :  { %911 = vmatpush2.bf16.msra.mxu1 %v1614_v1  ;;  %869 = vmatprep.subr.bf16.mxu0 %v1615_v2  ;;  %v1690_v1 = vld [vmem:[#allocation2 + $0x3c0] ss:$8 sps:$4 sm:$0xff]   ;;  %v1695_v2 = vld [vmem:[#allocation2 + $0x2b4] ss:$8 sps:$4 sm:$0xff]  }
  0x49   :  { %912 = vmatprep.subr.bf16.mxu1 %v1617_v3  ;;  %v1698_v3 = vld [vmem:[#allocation2 + $0x3b4] ss:$8 sps:$4 sm:$0xff]  }
  0x4b   :  { %870 = vmatpush2.bf16.msra.mxu0 %v1619_v4  ;;  %v1693_v4 = vld [vmem:[#allocation2 + $0x2b0] ss:$8 sps:$4 sm:$0xff]  }
  0x4c   :  { %913 = vmatpush2.bf16.msra.mxu1 %v1620_v5  ;;  %925 = vmatprep.subr.bf16.mxu0 %v1623_v10  ;;  %v1696_v5 = vld [vmem:[#allocation2 + $0x3b0] ss:$8 sps:$4 sm:$0xff]   ;;  %v1707_v10 = vld [vmem:[#allocation2 + $0x294] ss:$8 sps:$4 sm:$0xff]  }
  0x4d   :  { %968 = vmatprep.subr.bf16.mxu1 %v1626_v11  ;;  %v1710_v11 = vld [vmem:[#allocation2 + $0x394] ss:$8 sps:$4 sm:$0xff]  }
  0x4e   :  { %872 = vmatmul.mubr.bf16.vlgmr.msra.gmra.mxu0 %v51_v12  ;;  %v1705_v12 = vld [vmem:[#allocation2 + $0x290] ss:$8 sps:$4 sm:$0xff]  }
  0x4f   :  { %915 = vmatmul.mubr.bf16.vlgmr.msra.gmra.mxu1 %v53_v13  ;;  %926 = vmatpush1.bf16.msra.mxu0 %v1621_v14  ;;  %v1708_v13 = vld [vmem:[#allocation2 + $0x390] ss:$8 sps:$4 sm:$0xff]   ;;  %v1713_v14 = vld [vmem:[#allocation2 + $0x284] ss:$8 sps:$4 sm:$0xff]  }
  0x50   :  { %969 = vmatpush1.bf16.msra.mxu1 %v1624_v15  ;;  %927 = vmatprep.subr.bf16.mxu0 %v1629_v16  ;;  %v1716_v15 = vld [vmem:[#allocation2 + $0x384] ss:$8 sps:$4 sm:$0xff]   ;;  %v1711_v16 = vld [vmem:[#allocation2 + $0x280] ss:$8 sps:$4 sm:$0xff]  }
  0x51   :  { %970 = vmatprep.subr.bf16.mxu1 %v1632_v17  ;;  %957 = vmatprep.mubr.bf16.mxu0 %v56_v45  ;;  %v1714_v17 = vld [vmem:[#allocation2 + $0x380] ss:$8 sps:$4 sm:$0xff]   ;;  %v189_v45 = vlaneseq }
  0x52   :  { %1000 = vmatprep.mubr.bf16.mxu1 %v58_v49 }
  0x53   :  { %928 = vmatpush1.bf16.msra.mxu0 %v1627_v18  ;;  %v39_v18 = vld [vmem:[%s1945_s0 + $0x20] sm:$0xff]  ;;  %v190_v46 = vshrl.u32 %v189_v45, 7 }
  0x54   :  { %971 = vmatpush1.bf16.msra.mxu1 %v1630_v19  ;;  %929 = vmatprep.subr.bf16.mxu0 %v1635_v20  ;;  %v47_v19 = vld [vmem:[%s1945_s0 + $0x60] sm:$0xff]  ;;  %v41_v20 = vld [vmem:[%s1945_s0 + $0x30] sm:$0xff] }
  0x55   :  { %972 = vmatprep.subr.bf16.mxu1 %v1638_v21  ;;  %v49_v21 = vld [vmem:[%s1945_s0 + $0x70] sm:$0xff]  ;;  %v195_v49 = vsub.s32 1, %v190_v46 }
  0x57   :  { %930 = vmatpush1.bf16.msra.mxu0 %v1633_v22  ;;  %v55_v22 = vpack.c.bf16 %v47_v19, %v39_v18 }
  0x58   :  { %973 = vmatpush1.bf16.msra.mxu1 %v1636_v23  ;;  %931 = vmatprep.subr.bf16.mxu0 %v1641_v24  ;;  %v57_v23 = vpack.c.bf16 %v49_v21, %v41_v20  ;;  %v1717_v24 = vld [vmem:[%s1947_s2 + $0x78] sm:$0xff]  }
  0x59   :  { %974 = vmatprep.subr.bf16.mxu1 %v1644_v25  ;;  %v1718_v25 = vld [vmem:[%s1947_s2 + $0x38] sm:$0xff]  }
  0x5b   :  { %932 = vmatpush1.bf16.msra.mxu0 %v1639_v26  ;;  %v1719_v26 = vld [vmem:[%s1947_s2 + $0x70] sm:$0xff]  }
  0x5c   :  { %975 = vmatpush1.bf16.msra.mxu1 %v1642_v27  ;;  %933 = vmatprep.subr.bf16.mxu0 %v1647_v28  ;;  %v1720_v27 = vld [vmem:[%s1947_s2 + $0x30] sm:$0xff]   ;;  %v1721_v28 = vld [vmem:[%s1947_s2 + $0x68] sm:$0xff]  }
  0x5d   :  { %976 = vmatprep.subr.bf16.mxu1 %v1650_v29  ;;  %v1722_v29 = vld [vmem:[%s1947_s2 + $0x28] sm:$0xff]  }
  0x5f   :  { %934 = vmatpush1.bf16.msra.mxu0 %v1645_v30  ;;  %v1723_v30 = vld [vmem:[%s1947_s2 + $0x60] sm:$0xff]  }
  0x60   :  { %977 = vmatpush1.bf16.msra.mxu1 %v1648_v31  ;;  %935 = vmatprep.subr.bf16.mxu0 %v1653_v32  ;;  %v1724_v31 = vld [vmem:[%s1947_s2 + $0x20] sm:$0xff]   ;;  %v1725_v32 = vld [vmem:[%s1947_s2 + $0x58] sm:$0xff]  }
  0x61   :  { %978 = vmatprep.subr.bf16.mxu1 %v1656_v33  ;;  %v1726_v33 = vld [vmem:[%s1947_s2 + $0x18] sm:$0xff]  }
  0x63   :  { %936 = vmatpush1.bf16.msra.mxu0 %v1651_v34  ;;  %v1727_v34 = vld [vmem:[%s1947_s2 + $0x50] sm:$0xff]  }
  0x64   :  { %979 = vmatpush1.bf16.msra.mxu1 %v1654_v35  ;;  %937 = vmatprep.subr.bf16.mxu0 %v1659_v36  ;;  %v1728_v35 = vld [vmem:[%s1947_s2 + $0x10] sm:$0xff]   ;;  %v1729_v36 = vld [vmem:[%s1947_s2 + $0x48] sm:$0xff]  }
  0x65   :  { %980 = vmatprep.subr.bf16.mxu1 %v1662_v37  ;;  %v1730_v37 = vld [vmem:[%s1947_s2 + $0x8] sm:$0xff]  }
  0x67   :  { %938 = vmatpush1.bf16.msra.mxu0 %v1657_v38  ;;  %v1731_v38 = vld [vmem:[%s1947_s2 + $0x40] sm:$0xff]  }
  0x68   :  { %981 = vmatpush1.bf16.msra.mxu1 %v1660_v39  ;;  %939 = vmatprep.subr.bf16.mxu0 %v1665_v43  ;;  %v1732_v39 = vld [vmem:[%s1947_s2] sm:$0xff]   ;;  %v1735_v43 = vld [vmem:[%s1948_s3 + $0x28] sm:$0xff]  }
  0x69   :  { %982 = vmatprep.subr.bf16.mxu1 %v1668_v44  ;;  %v1736_v44 = vld [vmem:[%s1948_s3 + $0x20] sm:$0xff]  }
  0x6b   :  { %940 = vmatpush1.bf16.msra.mxu0 %v1663_v47 }
  0x6c   :  { %983 = vmatpush1.bf16.msra.mxu1 %v1666_v48  ;;  %941 = vmatprep.subr.bf16.mxu0 %v1671_v50  ;;  %v187_v50 = vld [vmem:[%s1949_s4] sm:$0x3] }
  0x6d   :  { %984 = vmatprep.subr.bf16.mxu1 %v1674_v51  ;;  %v191_v51 = vsub.s32 0, %v190_v46 }
  0x6f   :  { %942 = vmatpush2.bf16.msra.mxu0 %v1669_v52 }
  0x70   :  { %985 = vmatpush2.bf16.msra.mxu1 %v1672_v53  ;;  %943 = vmatprep.subr.bf16.mxu0 %v1677_v54  ;;  %v196_v54 = vrot.slane %v187_v50, %v195_v49 }
  0x71   :  { %986 = vmatprep.subr.bf16.mxu1 %v1680_v55  ;;  %v192_v55 = vrot.slane %v187_v50, %v191_v51 }
  0x73   :  { %944 = vmatpush2.bf16.msra.mxu0 %v1675_v56 }
  0x74   :  { %987 = vmatpush2.bf16.msra.mxu1 %v1678_v57  ;;  %945 = vmatprep.subr.bf16.mxu0 %v1683_v58 }
  0x75   :  { %988 = vmatprep.subr.bf16.mxu1 %v1686_v59 }
  0x77   :  { %946 = vmatpush2.bf16.msra.mxu0 %v1681_v60 }
  0x78   :  { %989 = vmatpush2.bf16.msra.mxu1 %v1684_v61  ;;  %947 = vmatprep.subr.bf16.mxu0 %v1689_v62 }
  0x79   :  { %990 = vmatprep.subr.bf16.mxu1 %v1692_v63 }
  0x7b   :  { %948 = vmatpush2.bf16.msra.mxu0 %v1687_v0 }
  0x7c   :  { %991 = vmatpush2.bf16.msra.mxu1 %v1690_v1  ;;  %949 = vmatprep.subr.bf16.mxu0 %v1695_v2 }
  0x7d   :  { %992 = vmatprep.subr.bf16.mxu1 %v1698_v3 }
  0x7f   :  { %950 = vmatpush2.bf16.msra.mxu0 %v1693_v4 }
  0x80   :  { %993 = vmatpush2.bf16.msra.mxu1 %v1696_v5  ;;  %951 = vmatprep.subr.bf16.mxu0 %v1701_v6 }
  0x81   :  { %994 = vmatprep.subr.bf16.mxu1 %v1704_v7 }
  0x83   :  { %952 = vmatpush2.bf16.msra.mxu0 %v1699_v8 }
  0x84   :  { %995 = vmatpush2.bf16.msra.mxu1 %v1702_v9  ;;  %953 = vmatprep.subr.bf16.mxu0 %v1707_v10 }
  0x85   :  { %996 = vmatprep.subr.bf16.mxu1 %v1710_v11 }
  0x87   :  { %954 = vmatpush2.bf16.msra.mxu0 %v1705_v12 }
  0x88   :  { %997 = vmatpush2.bf16.msra.mxu1 %v1708_v13  ;;  %955 = vmatprep.subr.bf16.mxu0 %v1713_v14 }
  0x89   :  { %998 = vmatprep.subr.bf16.mxu1 %v1716_v15 }
  0x8b   :  { %956 = vmatpush2.bf16.msra.mxu0 %v1711_v16 }
  0x8c   :  { %999 = vmatpush2.bf16.msra.mxu1 %v1714_v17  ;;  %1469 = vmatprep.subr.bf16.mxu0 %v1717_v24 }
  0x8d   :  { %1500 = vmatprep.subr.bf16.mxu1 %v1766_v41 }
  0x8e   :  { %958 = vmatmul.mubr.bf16.vlgmr.msra.gmra.mxu0 %v55_v22 }
  0x8f   :  { %1001 = vmatmul.mubr.bf16.vlgmr.msra.gmra.mxu1 %v57_v23  ;;  %1470 = vmatpush3.bf16.msra.mxu0 %v1718_v25 }
  0x90   :  { %1471 = vmatprep.subr.bf16.mxu0 %v1719_v26  ;;  %1501 = vmatpush3.bf16.msra.mxu1 %v1733_v40  ;;  %v1737_v26 = vld [vmem:[%s1948_s3 + $0x18] sm:$0xff]  }
  0x91   :  { %1502 = vmatprep.subr.bf16.mxu1 %v1766_v41  ;;  %1516 = vmatprep.mubr.msk.bf16.mxu1 %vm1767_vm0, %v1766_v41 }
  0x93   :  { %1472 = vmatpush3.bf16.msra.mxu0 %v1720_v27  ;;  %v1738_v27 = vld [vmem:[%s1948_s3 + $0x10] sm:$0xff]  }
  0x94   :  { %1473 = vmatprep.subr.bf16.mxu0 %v1721_v28  ;;  %1503 = vmatpush3.bf16.msra.mxu1 %v1734_v42  ;;  %v1739_v28 = vld [vmem:[%s1948_s3 + $0x8] sm:$0xff]  }
  0x95   :  { %1504 = vmatprep.subr.bf16.mxu1 %v1766_v41 }
  0x97   :  { %1474 = vmatpush3.bf16.msra.mxu0 %v1722_v29  ;;  %v1740_v29 = vld [vmem:[%s1948_s3] sm:$0xff]  }
  0x98   :  { %1475 = vmatprep.subr.bf16.mxu0 %v1723_v30  ;;  %1505 = vmatpush3.bf16.msra.mxu1 %v1735_v43 }
  0x99   :  { %1506 = vmatprep.subr.bf16.mxu1 %v1766_v41 }
  0x9b   :  { %1476 = vmatpush3.bf16.msra.mxu0 %v1724_v31 }
  0x9c   :  { %1477 = vmatprep.subr.bf16.mxu0 %v1725_v32  ;;  %1507 = vmatpush3.bf16.msra.mxu1 %v1736_v44 }
  0x9d   :  { %1508 = vmatprep.subr.bf16.mxu1 %v1766_v41 }
  0x9f   :  { %1478 = vmatpush3.bf16.msra.mxu0 %v1726_v33  ;;  %v1443_v33 = vld [vmem:[%s1949_s4 + $0x2] ss:$0 sm:$0xff] }
  0xa0   :  { %1479 = vmatprep.subr.bf16.mxu0 %v1727_v34  ;;  %1509 = vmatpush3.bf16.msra.mxu1 %v1737_v26 }
  0xa1   :  { %1510 = vmatprep.subr.bf16.mxu1 %v1766_v41 }
  0xa3   :  { %1480 = vmatpush3.bf16.msra.mxu0 %v1728_v35 }
  0xa4   :  { %1481 = vmatprep.subr.bf16.mxu0 %v1729_v36  ;;  %1511 = vmatpush3.bf16.msra.mxu1 %v1738_v27 }
  0xa5   :  { %1512 = vmatprep.subr.bf16.mxu1 %v1766_v41 }
  0xa7   :  { %1482 = vmatpush3.bf16.msra.mxu0 %v1730_v37 }
  0xa8   :  { %1483 = vmatprep.subr.bf16.mxu0 %v1731_v38  ;;  %1513 = vmatpush3.bf16.msra.mxu1 %v1739_v28 }
  0xa9   :  { %1514 = vmatprep.subr.bf16.mxu1 %v1766_v41  ;;  %v1460_v41 = vld [vmem:[%s1949_s4 + $0x3] ss:$0 sm:$0xff] }
  0xab   :  { %1484 = vmatpush3.bf16.msra.mxu0 %v1732_v39 }
  0xac   :  { %1515 = vmatpush3.bf16.msra.mxu1 %v1740_v29 }
 0x10e   :  { %v873_v47 = vpop.f32.mrf.mxu0 }
 0x10f   :  { %v916_v48 = vpop.f32.mrf.mxu1  ;;  %v874_v59 = vadd.f32 %v873_v47, %v192_v55 }
 0x110   :  { %v875_v52 = vpop.f32.mrf.mxu0 }
 0x111   :  { %v918_v53 = vpop.f32.mrf.mxu1  ;;  %v876_v58 = vadd.f32 %v875_v52, %v196_v54  ;;  %v917_v3 = vadd.f32 %v916_v48, %v874_v59 }
 0x112   :  { %v877_v56 = vpop.f32.mrf.mxu0 }
 0x113   :  { %v920_v57 = vpop.f32.mrf.mxu1  ;;  %v878_v62 = vadd.f32 %v877_v56, %v192_v55  ;;  %v919_v1 = vadd.f32 %v918_v53, %v876_v58 }
 0x114   :  { %v879_v60 = vpop.f32.mrf.mxu0 }
 0x115   :  { %v922_v61 = vpop.f32.mrf.mxu1  ;;  %v880_v2 = vadd.f32 %v879_v60, %v196_v54  ;;  %v921_v6 = vadd.f32 %v920_v57, %v878_v62 }
 0x117   :  { %v923_v11 = vadd.f32 %v922_v61, %v880_v2 }
 0x14e   :  { %v959_v63 = vpop.f32.mrf.mxu0 }
 0x14f   :  { %v1002_v0 = vpop.f32.mrf.mxu1  ;;  %v960_v8 = vadd.f32 %v959_v63, %v917_v3 }
 0x150   :  { %v961_v4 = vpop.f32.mrf.mxu0 }
 0x151   :  { %v1004_v5 = vpop.f32.mrf.mxu1  ;;  %v962_v7 = vadd.f32 %v961_v4, %v919_v1  ;;  %v1003_v17 = vadd.f32 %v1002_v0, %v960_v8 }
 0x152   :  { %v963_v9 = vpop.f32.mrf.mxu0 }
 0x153   :  { %v1006_v10 = vpop.f32.mrf.mxu1  ;;  %v964_v12 = vadd.f32 %v963_v9, %v921_v6  ;;  %v1005_v14 = vadd.f32 %v1004_v5, %v962_v7  ;;  %v1011_v23 = vmax.f32 %v1003_v17, 0.0 }
 0x154   :  { %v965_v13 = vpop.f32.mrf.mxu0 }
 0x155   :  { %v1007_v15 = vadd.f32 %v1006_v10, %v964_v12  ;;  %v966_v16 = vadd.f32 %v965_v13, %v923_v11  ;;  %v1008_v18 = vpop.f32.mrf.mxu1  ;;  %v1012_v21 = vmax.f32 %v1005_v14, 0.0 }
 0x157   :  { %v1009_v19 = vadd.f32 %v1008_v18, %v966_v16  ;;  %v1013_v20 = vmax.f32 %v1007_v15, 0.0 }
 0x159   :  { %v1014_v22 = vmax.f32 %v1009_v19, 0.0  ;;  %v1015_v25 = vpack.c.bf16 %v1013_v20, %v1011_v23 }
 0x15b   :  { %v1016_v24 = vpack.c.bf16 %v1014_v22, %v1012_v21 }
 0x15d   :  { %1184 = vmatprep.mubr.bf16.mxu0 %v1016_v24 }
 0x15e   :  { %1185 = vmatmul.mubr.bf16.vlgmr.msra.gmra.mxu0 %v1015_v25 }
 0x21e   :  { %v1485_v30 = vpop.f32.mrf.mxu0 }
 0x220   :  { %v1486_v31 = vpop.f32.mrf.mxu0 }
 0x221   :  { %v1487_v32 = vadd.f32 %v1486_v31, %v1485_v30 }
 0x222   :  { %v1488_v34 = vpop.f32.mrf.mxu0 }
 0x223   :  { %v1187_v36 = vadd.f32 %v1487_v32, %v1443_v33 }
 0x224   :  { %v1489_v35 = vpop.f32.mrf.mxu0 }
 0x225   :  { %v1490_v37 = vadd.f32 %v1489_v35, %v1488_v34  ;;  %v1193_v39 = vmax.f32 %v1187_v36, 0.0 }
 0x227   :  { %v1190_v38 = vadd.f32 %v1490_v37, %v1443_v33 }
 0x229   :  { %v1194_v40 = vmax.f32 %v1190_v38, 0.0 }
 0x22b   :  { %v1195_v42 = vpack.c.bf16 %v1194_v40, %v1193_v39 }
 0x22d   :  { %1517 = vmatmul.mubr.bf16.vlgmr.msra.gmra.mxu1 %v1195_v42 }
 0x2ed   :  { %v1301_v43 = vpop.f32.mrf.mxu1 }
 0x2ee   :  { %v1302_v44 = vadd.f32 %v1460_v41, %v1301_v43 }
 0x2ef   :  { %v1518_v45 = vpop.f32.mrf.mxu1 }
 0x2f0   :  { %1308 = vst [vmem:[%s1950_s5] sm:$0xff] %v1302_v44 }
 0x2f1   :  { %v1304_v46 = vpop.f32.mrf.mxu1 }
 0x2f2   :  { %v1305_v47 = vadd.f32 %v1460_v41, %v1304_v46 }
 0x2f3   :  { %v1519_v48 = vpop.f32.mrf.mxu1 }
 0x2f4   :  { %1309 = vst [vmem:[%s1950_s5 + $0x8] sm:$0xff] %v1305_v47 }
 0x2f5   :  { %1314 = vsyncpa [#allocation3], 1 }

</bundles_post_ra>
